<compile_context>
chip_gen: v7x
topology: tpu7x:2x2x1
jax: 0.10.0
libtpu: 0.0.40
codegen_flags: <defaults>
</compile_context>

<pallas_src>
import functools

import jax
import jax.numpy as jnp
from jax.experimental import pallas as pl
from jax.experimental.pallas import tpu as pltpu

N_EMBD = 256
DROPOUT_P = 0.2  # nn.Dropout(0.2) — identity in eval mode (training gated below)

_MEGACORE_MIN_ROWS = 128  # below this, splitting rows across 2 TCs isn't worth it


def _round_up(n, m):
    return ((n + m - 1) // m) * m


def _ffwd_kernel(x_ref, w1_ref, b1_ref, w2_ref, b2_ref, o_ref, *, h_chunk):
    # x_ref:  (tm, C)   f32 token tile (streamed; cast to bf16 per tile below)
    # w1_ref: (C, 4C)   bf16 first Linear weight (VMEM-resident, constant index)
    # b1_ref: (1, 4C)   f32
    # w2_ref: (4C, C)   bf16 second Linear weight (VMEM-resident)
    # b2_ref: (1, C)    f32
    # o_ref:  (tm, C)   output tile in x.dtype
    x = x_ref[...].astype(jnp.bfloat16)          # in-kernel cast: hides under MXU
    tm = x_ref.shape[0]
    C = o_ref.shape[1]
    H = w1_ref.shape[1]
    n_chunks = H // h_chunk                      # static; h_chunk divides H

    acc = jnp.zeros((tm, C), jnp.float32)
    for c in range(n_chunks):                    # small static unroll (<= 2 here)
        lo = c * h_chunk
        h = jnp.dot(x, w1_ref[:, lo:lo + h_chunk],
                    preferred_element_type=jnp.float32)
        h = jnp.maximum(h + b1_ref[:, lo:lo + h_chunk], 0.0)   # fused bias + ReLU (f32)
        acc = acc + jnp.dot(h.astype(jnp.bfloat16), w2_ref[lo:lo + h_chunk, :],
                            preferred_element_type=jnp.float32)
    y = acc + b2_ref[...]
    # TODO(synk): training-mode nn.Dropout(0.2) would need a pltpu.prng_seed +
    # pltpu.prng_random_bits keep-mask here; eval semantics (identity) are
    # implemented and training=True is rejected in the wrapper.
    o_ref[...] = y.astype(o_ref.dtype)


@functools.partial(jax.jit, static_argnames=("tm_max", "training"))
def feed_forward(x, w1, b1, w2, b2, *, tm_max=512, training=False):
    """x: (B, T, C) -> (B, T, C).  Pass w1/w2 already in bf16 to avoid per-call casts."""
    if training:
        raise NotImplementedError(
            "Dropout(0.2) training mode not implemented in this kernel; "
            "use training=False (eval semantics).")

    B, T, C = x.shape
    H = w1.shape[1]  # 4 * n_embd
    rows = B * T

    # bf16 matmul operands (native MXU input), f32 accumulation in-kernel.
    # Callers should pre-cast weights once; this fallback costs nothing if so.
    w1_bf = w1 if w1.dtype == jnp.bfloat16 else w1.astype(jnp.bfloat16)
    w2_bf = w2 if w2.dtype == jnp.bfloat16 else w2.astype(jnp.bfloat16)
    b1_2d = b1.reshape(1, H).astype(jnp.float32)
    b2_2d = b2.reshape(1, C).astype(jnp.float32)
    x2d = x.reshape(rows, C)                      # no cast, no pad: single f32 read

    # Adaptive row tile:
    #  - tiny inputs: one block covering all rows (no padded MXU work),
    #  - larger inputs: >= 2 grid steps (v7x megacore) capped at tm_max,
    #    with the ragged last block handled by Pallas boundary masking.
    if rows <= _MEGACORE_MIN_ROWS:
        tm = rows
    else:
        tm = min(tm_max, _round_up(pl.cdiv(rows, 2), 8))
    grid = (pl.cdiv(rows, tm),)

    # Hidden-dim chunking: keeps the (tm, h_chunk) intermediate small while the
    # bias+ReLU epilogue stays fused per chunk.
    h_chunk = 512 if (H > 512 and H % 512 == 0) else H

    out_dtype = x.dtype
    out_itemsize = jnp.dtype(out_dtype).itemsize

    # Advisory cost hint (real rows, real dtypes).
    flops = 2 * rows * C * H * 2                  # two matmuls
    bytes_accessed = (rows * C * 4                # f32 x read
                      + (C * H + H * C) * 2       # bf16 weights
                      + (H + C) * 4               # f32 biases
                      + rows * C * out_itemsize)  # output writeback

    kernel = functools.partial(_ffwd_kernel, h_chunk=h_chunk)

    out2d = pl.pallas_call(
        kernel,
        out_shape=jax.ShapeDtypeStruct((rows, C), out_dtype),
        grid_spec=pltpu.PrefetchScalarGridSpec(
            num_scalar_prefetch=0,
            grid=grid,
            in_specs=[
                pl.BlockSpec((tm, C), lambda i: (i, 0)),   # x tile (streamed, f32)
                pl.BlockSpec((C, H), lambda i: (0, 0)),    # W1 (resident, bf16)
                pl.BlockSpec((1, H), lambda i: (0, 0)),    # b1
                pl.BlockSpec((H, C), lambda i: (0, 0)),    # W2 (resident, bf16)
                pl.BlockSpec((1, C), lambda i: (0, 0)),    # b2
            ],
            out_specs=pl.BlockSpec((tm, C), lambda i: (i, 0)),
        ),
        compiler_params=pltpu.CompilerParams(
            dimension_semantics=("parallel",),     # megacore sharding on v7x
            vmem_limit_bytes=32 * 1024 * 1024,     # ~7 MiB used at tm=512; safe on v5e/v6e/v7x
        ),
        cost_estimate=pl.CostEstimate(
            flops=flops, transcendentals=0, bytes_accessed=bytes_accessed),
    )(x2d, w1_bf, b1_2d, w2_bf, b2_2d)

    return out2d.reshape(B, T, C)


def init_params(key, n_embd):
    """Deterministic init matching torch.nn.Linear's U(-1/sqrt(in), 1/sqrt(in))."""
    h = 4 * n_embd
    k1, k2, k3, k4 = jax.random.split(key, 4)
    bound1 = 1.0 / jnp.sqrt(n_embd)
    bound2 = 1.0 / jnp.sqrt(h)
    # stored as (in, out) so the kernel does x @ W directly
    w1 = jax.random.uniform(k1, (n_embd, h), jnp.float32, -bound1, bound1)
    b1 = jax.random.uniform(k2, (h,), jnp.float32, -bound1, bound1)
    w2 = jax.random.uniform(k3, (h, n_embd), jnp.float32, -bound2, bound2)
    b2 = jax.random.uniform(k4, (n_embd,), jnp.float32, -bound2, bound2)
    return w1, b1, w2, b2


if __name__ == "__main__":
    key = jax.random.PRNGKey(0)
    kx, kp = jax.random.split(key)

    B, T, C = 2, 8, N_EMBD
    x = jax.random.normal(kx, (B, T, C), jnp.float32)
    w1, b1, w2, b2 = init_params(kp, C)

    # One-time bf16 weight copies outside jit (no per-call HBM cast pass).
    w1_bf = w1.astype(jnp.bfloat16)
    w2_bf = w2.astype(jnp.bfloat16)

    out = feed_forward(x, w1_bf, b1, w2_bf, b2)
    out = jax.block_until_ready(out)

    # Sanity check vs plain-JAX f32 reference (dropout in eval mode == identity);
    # tolerance loosened because the kernel's matmul operands are bf16
    # (f32 accumulation).
    ref = jnp.maximum(x.reshape(-1, C) @ w1 + b1, 0.0) @ w2 + b2
    ref = ref.reshape(B, T, C)
    assert out.shape == (B, T, C)
    assert out.dtype == x.dtype
    assert jnp.allclose(out, ref, atol=3e-2, rtol=3e-2), (
        float(jnp.max(jnp.abs(out - ref))))

    print("KERNEL_OK")
</pallas_src>

<mosaic_0001>
module attributes {stable_mosaic.version = 11 : i64} {
  func.func @_ffwd_kernel(%arg0: i32, %arg1: memref<16x256xf32, #tpu.memory_space<vmem>>, %arg2: memref<256x1024xbf16, #tpu.memory_space<vmem>>, %arg3: memref<1x1024xf32, #tpu.memory_space<vmem>>, %arg4: memref<1024x256xbf16, #tpu.memory_space<vmem>>, %arg5: memref<1x256xf32, #tpu.memory_space<vmem>>, %arg6: memref<16x256xf32, #tpu.memory_space<vmem>>) attributes {dimension_semantics = [#tpu.dimension_semantics<parallel>], iteration_bounds = array<i64: 1>, scalar_prefetch = 0 : i64, scratch_operands = 0 : i64, tpu.core_type = #tpu.core_type<tc>, window_params = [{transform_indices = @transform_0, window_bounds = array<i64: 16, 256>}, {pipeline_mode = #tpu.pipeline_mode<synchronous>, transform_indices = @transform_1, window_bounds = array<i64: 256, 1024>}, {pipeline_mode = #tpu.pipeline_mode<synchronous>, transform_indices = @transform_2, window_bounds = array<i64: 1, 1024>}, {pipeline_mode = #tpu.pipeline_mode<synchronous>, transform_indices = @transform_3, window_bounds = array<i64: 1024, 256>}, {pipeline_mode = #tpu.pipeline_mode<synchronous>, transform_indices = @transform_4, window_bounds = array<i64: 1, 256>}, {transform_indices = @transform_5, window_bounds = array<i64: 16, 256>}]} {
    %c0 = arith.constant 0 : index
    %c0_0 = arith.constant 0 : index
    %0 = vector.load %arg1[%c0, %c0_0] : memref<16x256xf32, #tpu.memory_space<vmem>>, vector<16x256xf32>
    %1 = arith.truncf %0 : vector<16x256xf32> to vector<16x256xbf16>
    %cst = arith.constant 0.000000e+00 : f32
    %2 = vector.broadcast %cst : f32 to vector<16x256xf32>
    %c0_1 = arith.constant 0 : index
    %c0_2 = arith.constant 0 : index
    %3 = vector.load %arg2[%c0_1, %c0_2] : memref<256x1024xbf16, #tpu.memory_space<vmem>>, vector<256x512xbf16>
    %cst_3 = arith.constant dense<0.000000e+00> : vector<16x512xf32>
    %4 = tpu.matmul %1, %3, %cst_3 {dimension_numbers = #tpu.dot_dimension_numbers<[1], [0], [0], [1], [0, 0, 1, 1], [], []>} : vector<16x256xbf16>, vector<256x512xbf16>, vector<16x512xf32> -> vector<16x512xf32>
    %c0_4 = arith.constant 0 : index
    %c0_5 = arith.constant 0 : index
    %5 = vector.load %arg3[%c0_4, %c0_5] : memref<1x1024xf32, #tpu.memory_space<vmem>>, vector<1x512xf32>
    %6 = vector.broadcast %5 : vector<1x512xf32> to vector<16x512xf32>
    %7 = arith.addf %4, %6 : vector<16x512xf32>
    %cst_6 = arith.constant 0.000000e+00 : f32
    %8 = vector.broadcast %cst_6 : f32 to vector<16x512xf32>
    %9 = arith.maximumf %7, %8 : vector<16x512xf32>
    %10 = arith.truncf %9 : vector<16x512xf32> to vector<16x512xbf16>
    %c0_7 = arith.constant 0 : index
    %c0_8 = arith.constant 0 : index
    %11 = vector.load %arg4[%c0_7, %c0_8] : memref<1024x256xbf16, #tpu.memory_space<vmem>>, vector<512x256xbf16>
    %cst_9 = arith.constant dense<0.000000e+00> : vector<16x256xf32>
    %12 = tpu.matmul %10, %11, %cst_9 {dimension_numbers = #tpu.dot_dimension_numbers<[1], [0], [0], [1], [0, 0, 1, 1], [], []>} : vector<16x512xbf16>, vector<512x256xbf16>, vector<16x256xf32> -> vector<16x256xf32>
    %13 = arith.addf %2, %12 : vector<16x256xf32>
    %c0_10 = arith.constant 0 : index
    %c512 = arith.constant 512 : index
    %14 = vector.load %arg2[%c0_10, %c512] : memref<256x1024xbf16, #tpu.memory_space<vmem>>, vector<256x512xbf16>
    %cst_11 = arith.constant dense<0.000000e+00> : vector<16x512xf32>
    %15 = tpu.matmul %1, %14, %cst_11 {dimension_numbers = #tpu.dot_dimension_numbers<[1], [0], [0], [1], [0, 0, 1, 1], [], []>} : vector<16x256xbf16>, vector<256x512xbf16>, vector<16x512xf32> -> vector<16x512xf32>
    %c0_12 = arith.constant 0 : index
    %c512_13 = arith.constant 512 : index
    %16 = vector.load %arg3[%c0_12, %c512_13] : memref<1x1024xf32, #tpu.memory_space<vmem>>, vector<1x512xf32>
    %17 = vector.broadcast %16 : vector<1x512xf32> to vector<16x512xf32>
    %18 = arith.addf %15, %17 : vector<16x512xf32>
    %cst_14 = arith.constant 0.000000e+00 : f32
    %19 = vector.broadcast %cst_14 : f32 to vector<16x512xf32>
    %20 = arith.maximumf %18, %19 : vector<16x512xf32>
    %21 = arith.truncf %20 : vector<16x512xf32> to vector<16x512xbf16>
    %c512_15 = arith.constant 512 : index
    %c0_16 = arith.constant 0 : index
    %22 = vector.load %arg4[%c512_15, %c0_16] : memref<1024x256xbf16, #tpu.memory_space<vmem>>, vector<512x256xbf16>
    %cst_17 = arith.constant dense<0.000000e+00> : vector<16x256xf32>
    %23 = tpu.matmul %21, %22, %cst_17 {dimension_numbers = #tpu.dot_dimension_numbers<[1], [0], [0], [1], [0, 0, 1, 1], [], []>} : vector<16x512xbf16>, vector<512x256xbf16>, vector<16x256xf32> -> vector<16x256xf32>
    %24 = arith.addf %13, %23 : vector<16x256xf32>
    %c0_18 = arith.constant 0 : index
    %c0_19 = arith.constant 0 : index
    %25 = vector.load %arg5[%c0_18, %c0_19] : memref<1x256xf32, #tpu.memory_space<vmem>>, vector<1x256xf32>
    %26 = vector.broadcast %25 : vector<1x256xf32> to vector<16x256xf32>
    %27 = arith.addf %24, %26 : vector<16x256xf32>
    %c0_20 = arith.constant 0 : index
    %c0_21 = arith.constant 0 : index
    %28 = vector.load %arg6[%c0_20, %c0_21] : memref<16x256xf32, #tpu.memory_space<vmem>>, vector<16x256xf32>
    tpu.vector_store %arg6[%c0_20, %c0_21], %27 {strides = array<i32>} : memref<16x256xf32, #tpu.memory_space<vmem>>, vector<16x256xf32>,
    return
  }
  func.func @transform_0(%arg0: i32) -> (i32, i32) {
    %c0_i32 = arith.constant 0 : i32
    %c0_i32_0 = arith.constant 0 : i32
    return %arg0, %c0_i32 : i32, i32
  }
  func.func @transform_1(%arg0: i32) -> (i32, i32) {
    %c0_i32 = arith.constant 0 : i32
    %c0_i32_0 = arith.constant 0 : i32
    %c0_i32_1 = arith.constant 0 : i32
    return %c0_i32, %c0_i32_0 : i32, i32
  }
  func.func @transform_2(%arg0: i32) -> (i32, i32) {
    %c0_i32 = arith.constant 0 : i32
    %c0_i32_0 = arith.constant 0 : i32
    %c0_i32_1 = arith.constant 0 : i32
    return %c0_i32, %c0_i32_0 : i32, i32
  }
  func.func @transform_3(%arg0: i32) -> (i32, i32) {
    %c0_i32 = arith.constant 0 : i32
    %c0_i32_0 = arith.constant 0 : i32
    %c0_i32_1 = arith.constant 0 : i32
    return %c0_i32, %c0_i32_0 : i32, i32
  }
  func.func @transform_4(%arg0: i32) -> (i32, i32) {
    %c0_i32 = arith.constant 0 : i32
    %c0_i32_0 = arith.constant 0 : i32
    %c0_i32_1 = arith.constant 0 : i32
    return %c0_i32, %c0_i32_0 : i32, i32
  }
  func.func @transform_5(%arg0: i32) -> (i32, i32) {
    %c0_i32 = arith.constant 0 : i32
    %c0_i32_0 = arith.constant 0 : i32
    return %arg0, %c0_i32 : i32, i32
  }
}

</mosaic_0001>

<bundles_post_ra>
// kernel: feed_forward.1
= control target key start
LH: loop header
LB: loop body
LE: loop exit
PB: predicated region body
PF: predicated region fallthrough
CT: control target
= control target key end

     0   :  { %10 = vsyncpa [#allocation3], 0  ;;  %s2775_s0 = inlined_call_operand.hbm [shape: f32[16,256], index: 0, kind: input, shape index: {}]   ;;  %s2776_s1 = inlined_call_operand.hbm [shape: bf16[256,1024], index: 1, kind: input, shape index: {}]   ;;  %s2777_s2 = inlined_call_operand.vmem [shape: f32[1,1024], index: 2, kind: input, shape index: {}]   ;;  %s2778_s3 = inlined_call_operand.hbm [shape: bf16[1024,256], index: 3, kind: input, shape index: {}]   ;;  %s2779_s4 = inlined_call_operand.vmem [shape: f32[1,256], index: 4, kind: input, shape index: {}]   ;;  %s2780_s5 = inlined_call_operand.hbm [shape: f32[16,256], index: 5, kind: output, shape index: {}]  }
   0x1   :  { %11 = vsyncpa [#allocation6], 0 }
   0x2   :  { %12 = vsyncpa [#allocation4], 0  ;;  %s2618_s18 = smov [#allocation5]   ;;  %s2524_s22 = scalar_lea.hbm %s2776_s1, 16384 }
   0x3   :  { %s30_s19 = sshll.u32 %s2618_s18, 4  ;;  %p2525_p0 = scmp.ne.s32.totalorder %s2776_s1, %s2524_s22  ;;  %s31_s19 = int_to_ptr.vmem [resolvable:$true] %s30_s19 }
   0x4   :  { %p2528_p1 = scmp.lt.u32.totalorder %s2524_s22, %s2776_s1 }
   0x6   :  { %p2530_p2 = pnand %p2528_p1, %p2525_p0 }
   0x8   :  { %2533 = shalt.err (!%p2530_p2)
}
   0x9   :  { %s2534_s27 = scalar_lea.vmem %s31_s19, 16384  ;;  %p2539_p4 = scmp.lt.s32.totalorder %s31_s19, %s31_s19 }
   0xa   :  { %p2535_p3 = scmp.ne.s32.totalorder %s31_s19, %s2534_s27  ;;  %p2540_p5 = scmp.lt.s32.totalorder %s2534_s27, %s2534_s27 }
   0xc   :  { %p2541_p6 = por %p2540_p5, %p2539_p4 }
   0xe   :  { %p2542_p7 = pnand %p2541_p6, %p2535_p3 }
  0x10   :  { %2545 = shalt.err (!%p2542_p7)
}
  0x11   :  { %s2619_s28 = smov 512   ;;  %s2620_s29 = smov 32  }
  0x12   :  { %36 = dma.hbm_to_vmem [thread:$0]  %s2776_s1, 16384, %s31_s19, [#allocation6], %s2619_s28, %s2619_s28, %s2620_s29  }
  0x13   :  { %s2621_s7 = smov [#allocation2]   ;;  %s2546_s11 = scalar_lea.hbm %s2775_s0, 512 }
  0x14   :  { %s18_s8 = sshll.u32 %s2621_s7, 4  ;;  %p2547_p8 = scmp.ne.s32.totalorder %s2775_s0, %s2546_s11  ;;  %s19_s8 = int_to_ptr.vmem [resolvable:$true] %s18_s8 }
  0x15   :  { %p2550_p9 = scmp.lt.u32.totalorder %s2546_s11, %s2775_s0 }
  0x17   :  { %p2552_p10 = pnand %p2550_p9, %p2547_p8 }
  0x19   :  { %2555 = shalt.err (!%p2552_p10)
}
  0x1a   :  { %s2556_s16 = scalar_lea.vmem %s19_s8, 512  ;;  %p2561_p12 = scmp.lt.s32.totalorder %s19_s8, %s19_s8 }
  0x1b   :  { %p2557_p11 = scmp.ne.s32.totalorder %s19_s8, %s2556_s16  ;;  %p2562_p13 = scmp.lt.s32.totalorder %s2556_s16, %s2556_s16 }
  0x1d   :  { %p2563_p0 = por %p2562_p13, %p2561_p12 }
  0x1f   :  { %p2564_p1 = pnand %p2563_p0, %p2557_p11 }
  0x21   :  { %2567 = shalt.err (!%p2564_p1)
}
  0x22   :  { %s2622_s1 = smov 256   ;;  %s2623_s17 = smov 16  }
  0x23   :  { %24 = dma.hbm_to_vmem [thread:$0]  %s2775_s0, 512, %s19_s8, [#allocation3], %s2622_s1, %s2622_s1, %s2623_s17  }
  0x24   :  { %s2624_s20 = smov [#allocation7]   ;;  %s2568_s24 = scalar_lea.hbm %s2778_s3, 16384 }
  0x25   :  { %s44_s21 = sshll.u32 %s2624_s20, 4  ;;  %p2569_p2 = scmp.ne.s32.totalorder %s2778_s3, %s2568_s24  ;;  %s45_s21 = int_to_ptr.vmem [resolvable:$true] %s44_s21 }
  0x26   :  { %p2572_p3 = scmp.lt.u32.totalorder %s2568_s24, %s2778_s3 }
  0x28   :  { %p2574_p4 = pnand %p2572_p3, %p2569_p2 }
  0x2a   :  { %2577 = shalt.err (!%p2574_p4)
}
  0x2b   :  { %s2578_s29 = scalar_lea.vmem %s45_s21, 16384  ;;  %p2583_p6 = scmp.lt.s32.totalorder %s45_s21, %s45_s21 }
  0x2c   :  { %p2579_p5 = scmp.ne.s32.totalorder %s45_s21, %s2578_s29  ;;  %p2584_p7 = scmp.lt.s32.totalorder %s2578_s29, %s2578_s29 }
  0x2e   :  { %p2585_p8 = por %p2584_p7, %p2583_p6 }
  0x30   :  { %p2586_p9 = pnand %p2585_p8, %p2579_p5 }
  0x32   :  { %2589 = shalt.err (!%p2586_p9)
}
  0x33   :  { %s2625_s0 = smov 128   ;;  %s2626_s30 = smov 8  }
  0x34   :  { %50 = dma.hbm_to_vmem [thread:$0]  %s2778_s3, 16384, %s45_s21, [#allocation6], %s2625_s0, %s2625_s0, %s2626_s30  }
  0x35   :  { %2612 = dma.done.wait [#allocation3], 512  }
  0x36   :  { %2613 = vsyncadd [#allocation3], 4294966784 }
  0x37   :  { %2614 = dma.done.wait [#allocation6], 32768  }
  0x38   :  { %2615 = vsyncadd [#allocation6], 4294934528  ;;  %v68_v0 = vld [vmem:[#allocation5] sm:$0xff]  ;;  %v63_v17 = vld [vmem:[#allocation2 + $0x8] sm:$0xff]  ;;  %s2627_s12 = smov [#allocation8]  }
  0x39   :  { %v70_v1 = vld [vmem:[#allocation5 + $0x20] sm:$0xff]  ;;  %v65_v18 = vld [vmem:[#allocation2 + $0x18] sm:$0xff]  ;;  %s2041_s13 = sshll.u32 %s2627_s12, 4  ;;  %s2042_s13 = int_to_ptr.vmem [resolvable:$true] %s2041_s13 }
  0x3a   :  { %v72_v2 = vld [vmem:[#allocation5 + $0x40] sm:$0xff]  ;;  %v2055_v3 = vcombine.high %v68_v0, %v70_v1  ;;  %v2054_v4 = vcombine.low %v68_v0, %v70_v1  ;;  %v2697_v20 = vpack.c.bf16 %v65_v18, %v63_v17  ;;  %v69_v1 = vld [vmem:[#allocation5 + $0x8] sm:$0xff]  ;;  %p2595_p11 = scmp.lt.s32.totalorder %s2042_s13, %s2042_s13 }
  0x3b   :  { %v74_v5 = vld [vmem:[#allocation5 + $0x60] sm:$0xff]  ;;  %v83_v17 = vld [vmem:[#allocation5 + $0xe8] sm:$0xff] }
  0x3c   :  { %v2059_v6 = vcombine.high %v72_v2, %v74_v5  ;;  %v76_v7 = vld [vmem:[#allocation5 + $0x80] sm:$0xff]  ;;  %474 = vmatprep.subr.bf16.mxu1 %v2055_v3  ;;  %v2058_v9 = vcombine.low %v72_v2, %v74_v5  ;;  %506 = vmatprep.mubr.bf16.mxu1 %v2697_v20  ;;  %v71_v2 = vld [vmem:[#allocation5 + $0x28] sm:$0xff]  ;;  %v64_v5 = vld [vmem:[#allocation2 + $0x10] sm:$0xff] }
  0x3d   :  { %v78_v8 = vld [vmem:[#allocation5 + $0xa0] sm:$0xff]  ;;  %475 = vmatpush1.bf16.msra.mxu1 %v2054_v4 }
  0x3e   :  { %476 = vmatprep.subr.bf16.mxu1 %v2059_v6  ;;  %v2063_v10 = vcombine.high %v76_v7, %v78_v8  ;;  %v80_v11 = vld [vmem:[#allocation5 + $0xc0] sm:$0xff]  ;;  %v2062_v13 = vcombine.low %v76_v7, %v78_v8  ;;  %v73_v7 = vld [vmem:[#allocation5 + $0x48] sm:$0xff] }
  0x3f   :  { %v82_v12 = vld [vmem:[#allocation5 + $0xe0] sm:$0xff]  ;;  %v75_v8 = vld [vmem:[#allocation5 + $0x68] sm:$0xff] }
  0x40   :  { %v2067_v14 = vcombine.high %v80_v11, %v82_v12  ;;  %v84_v15 = vld [vmem:[#allocation5 + $0x100] sm:$0xff]  ;;  %v2066_v19 = vcombine.low %v80_v11, %v82_v12  ;;  %v2056_v11 = vcombine.low %v69_v1, %v71_v2  ;;  %v77_v12 = vld [vmem:[#allocation5 + $0x88] sm:$0xff] }
  0x41   :  { %477 = vmatpush1.bf16.msra.mxu1 %v2058_v9  ;;  %v86_v16 = vld [vmem:[#allocation5 + $0x120] sm:$0xff]  ;;  %v2057_v9 = vcombine.high %v69_v1, %v71_v2  ;;  %v129_v2 = vld [vmem:[#allocation5 + $0x3c8] sm:$0xff] }
  0x42   :  { %478 = vmatprep.subr.bf16.mxu1 %v2063_v10  ;;  %v2071_v21 = vcombine.high %v84_v15, %v86_v16  ;;  %v88_v22 = vld [vmem:[#allocation5 + $0x140] sm:$0xff]  ;;  %v2070_v24 = vcombine.low %v84_v15, %v86_v16  ;;  %v2060_v15 = vcombine.low %v73_v7, %v75_v8  ;;  %v81_v16 = vld [vmem:[#allocation5 + $0xc8] sm:$0xff] }
  0x43   :  { %v90_v23 = vld [vmem:[#allocation5 + $0x160] sm:$0xff] }
  0x44   :  { %v2075_v25 = vcombine.high %v88_v22, %v90_v23  ;;  %v92_v26 = vld [vmem:[#allocation5 + $0x180] sm:$0xff]  ;;  %v2074_v28 = vcombine.low %v88_v22, %v90_v23  ;;  %v87_v22 = vld [vmem:[#allocation5 + $0x128] sm:$0xff]  ;;  %v2069_v23 = vcombine.high %v81_v16, %v83_v17 }
  0x45   :  { %479 = vmatpush1.bf16.msra.mxu1 %v2062_v13  ;;  %v94_v27 = vld [vmem:[#allocation5 + $0x1a0] sm:$0xff]  ;;  %v79_v13 = vld [vmem:[#allocation5 + $0xa8] sm:$0xff] }
  0x46   :  { %480 = vmatprep.subr.bf16.mxu1 %v2067_v14  ;;  %v2079_v29 = vcombine.high %v92_v26, %v94_v27  ;;  %v96_v30 = vld [vmem:[#allocation5 + $0x1c0] sm:$0xff]  ;;  %v2078_v32 = vcombine.low %v92_v26, %v94_v27  ;;  %v2061_v14 = vcombine.high %v73_v7, %v75_v8  ;;  %v2065_v18 = vcombine.high %v77_v12, %v79_v13  ;;  %v91_v27 = vld [vmem:[#allocation5 + $0x168] sm:$0xff]  ;;  %v638_v7 = vld [vmem:[#allocation5 + $0x30] sm:$0xff] }
  0x47   :  { %v98_v31 = vld [vmem:[#allocation5 + $0x1e0] sm:$0xff] }
  0x48   :  { %v2083_v33 = vcombine.high %v96_v30, %v98_v31  ;;  %v100_v34 = vld [vmem:[#allocation5 + $0x200] sm:$0xff]  ;;  %v2082_v36 = vcombine.low %v96_v30, %v98_v31  ;;  %v93_v30 = vld [vmem:[#allocation5 + $0x188] sm:$0xff] }
  0x49   :  { %481 = vmatpush1.bf16.msra.mxu1 %v2066_v19  ;;  %v102_v35 = vld [vmem:[#allocation5 + $0x220] sm:$0xff]  ;;  %v2064_v19 = vcombine.low %v77_v12, %v79_v13  ;;  %v95_v31 = vld [vmem:[#allocation5 + $0x1a8] sm:$0xff]  ;;  %v642_v12 = vld [vmem:[#allocation5 + $0x70] sm:$0xff] }
  0x4a   :  { %482 = vmatprep.subr.bf16.mxu1 %v2071_v21  ;;  %v104_v37 = vld [vmem:[#allocation5 + $0x240] sm:$0xff]  ;;  %v2087_v39 = vcombine.high %v100_v34, %v102_v35  ;;  %v2086_v40 = vcombine.low %v100_v34, %v102_v35  ;;  %v85_v21 = vld [vmem:[#allocation5 + $0x108] sm:$0xff] }
  0x4b   :  { %v106_v38 = vld [vmem:[#allocation5 + $0x260] sm:$0xff]  ;;  %v2073_v26 = vcombine.high %v85_v21, %v87_v22  ;;  %v97_v34 = vld [vmem:[#allocation5 + $0x1c8] sm:$0xff] }
  0x4c   :  { %v108_v41 = vld [vmem:[#allocation5 + $0x280] sm:$0xff]  ;;  %v2091_v43 = vcombine.high %v104_v37, %v106_v38  ;;  %v2090_v44 = vcombine.low %v104_v37, %v106_v38  ;;  %v99_v35 = vld [vmem:[#allocation5 + $0x1e8] sm:$0xff] }
  0x4d   :  { %483 = vmatpush1.bf16.msra.mxu1 %v2070_v24  ;;  %v110_v42 = vld [vmem:[#allocation5 + $0x2a0] sm:$0xff]  ;;  %v2068_v24 = vcombine.low %v81_v16, %v83_v17  ;;  %v2085_v37 = vcombine.high %v97_v34, %v99_v35  ;;  %v101_v38 = vld [vmem:[#allocation5 + $0x208] sm:$0xff]  ;;  %v646_v16 = vld [vmem:[#allocation5 + $0xb0] sm:$0xff] }
  0x4e   :  { %484 = vmatprep.subr.bf16.mxu1 %v2075_v25  ;;  %v112_v45 = vld [vmem:[#allocation5 + $0x2c0] sm:$0xff]  ;;  %v2095_v47 = vcombine.high %v108_v41, %v110_v42  ;;  %v2094_v48 = vcombine.low %v108_v41, %v110_v42  ;;  %v89_v25 = vld [vmem:[#allocation5 + $0x148] sm:$0xff] }
  0x4f   :  { %v114_v46 = vld [vmem:[#allocation5 + $0x2e0] sm:$0xff]  ;;  %v105_v42 = vld [vmem:[#allocation5 + $0x248] sm:$0xff] }
  0x50   :  { %v116_v49 = vld [vmem:[#allocation5 + $0x300] sm:$0xff]  ;;  %v2099_v51 = vcombine.high %v112_v45, %v114_v46  ;;  %v2098_v52 = vcombine.low %v112_v45, %v114_v46  ;;  %v109_v46 = vld [vmem:[#allocation5 + $0x288] sm:$0xff] }
  0x51   :  { %485 = vmatpush1.bf16.msra.mxu1 %v2074_v28  ;;  %v118_v50 = vld [vmem:[#allocation5 + $0x320] sm:$0xff]  ;;  %v2072_v28 = vcombine.low %v85_v21, %v87_v22  ;;  %v650_v21 = vld [vmem:[#allocation5 + $0xf0] sm:$0xff] }
  0x52   :  { %486 = vmatprep.subr.bf16.mxu1 %v2079_v29  ;;  %v120_v53 = vld [vmem:[#allocation5 + $0x340] sm:$0xff]  ;;  %v2103_v55 = vcombine.high %v116_v49, %v118_v50  ;;  %v2102_v56 = vcombine.low %v116_v49, %v118_v50  ;;  %v2077_v29 = vcombine.high %v89_v25, %v91_v27  ;;  %v113_v50 = vld [vmem:[#allocation5 + $0x2c8] sm:$0xff] }
  0x53   :  { %v122_v54 = vld [vmem:[#allocation5 + $0x360] sm:$0xff] }
  0x54   :  { %v124_v57 = vld [vmem:[#allocation5 + $0x380] sm:$0xff]  ;;  %v2107_v59 = vcombine.high %v120_v53, %v122_v54  ;;  %v2106_v60 = vcombine.low %v120_v53, %v122_v54  ;;  %v117_v54 = vld [vmem:[#allocation5 + $0x308] sm:$0xff] }
  0x55   :  { %487 = vmatpush1.bf16.msra.mxu1 %v2078_v32  ;;  %v126_v58 = vld [vmem:[#allocation5 + $0x3a0] sm:$0xff]  ;;  %v2076_v32 = vcombine.low %v89_v25, %v91_v27  ;;  %v654_v25 = vld [vmem:[#allocation5 + $0x130] sm:$0xff] }
  0x56   :  { %488 = vmatprep.subr.bf16.mxu1 %v2083_v33  ;;  %v128_v61 = vld [vmem:[#allocation5 + $0x3c0] sm:$0xff]  ;;  %v2111_v63 = vcombine.high %v124_v57, %v126_v58  ;;  %v2110_v0 = vcombine.low %v124_v57, %v126_v58  ;;  %v2081_v33 = vcombine.high %v93_v30, %v95_v31  ;;  %v121_v58 = vld [vmem:[#allocation5 + $0x348] sm:$0xff] }
  0x57   :  { %v130_v62 = vld [vmem:[#allocation5 + $0x3e0] sm:$0xff] }
  0x58   :  { %v2115_v3 = vcombine.high %v128_v61, %v130_v62  ;;  %v62_v4 = vld [vmem:[#allocation2] sm:$0xff]  ;;  %v2114_v6 = vcombine.low %v128_v61, %v130_v62  ;;  %v125_v62 = vld [vmem:[#allocation5 + $0x388] sm:$0xff] }
  0x59   :  { %489 = vmatpush1.bf16.msra.mxu1 %v2082_v36  ;;  %v2700_v10 = vpack.c.bf16 %v64_v5, %v62_v4  ;;  %v2080_v36 = vcombine.low %v93_v30, %v95_v31 }
  0x5a   :  { %490 = vmatprep.subr.bf16.mxu1 %v2087_v39  ;;  %v103_v39 = vld [vmem:[#allocation5 + $0x228] sm:$0xff] }
  0x5b   :  { %v2089_v41 = vcombine.high %v101_v38, %v103_v39 }
  0x5d   :  { %491 = vmatpush1.bf16.msra.mxu1 %v2086_v40  ;;  %v2084_v40 = vcombine.low %v97_v34, %v99_v35 }
  0x5e   :  { %492 = vmatprep.subr.bf16.mxu1 %v2091_v43  ;;  %v107_v43 = vld [vmem:[#allocation5 + $0x268] sm:$0xff] }
  0x5f   :  { %v2093_v45 = vcombine.high %v105_v42, %v107_v43 }
  0x61   :  { %493 = vmatpush1.bf16.msra.mxu1 %v2090_v44  ;;  %v2088_v44 = vcombine.low %v101_v38, %v103_v39 }
  0x62   :  { %494 = vmatprep.subr.bf16.mxu1 %v2095_v47  ;;  %v111_v47 = vld [vmem:[#allocation5 + $0x2a8] sm:$0xff] }
  0x63   :  { %v2097_v49 = vcombine.high %v109_v46, %v111_v47 }
  0x65   :  { %495 = vmatpush1.bf16.msra.mxu1 %v2094_v48  ;;  %v2092_v48 = vcombine.low %v105_v42, %v107_v43 }
  0x66   :  { %496 = vmatprep.subr.bf16.mxu1 %v2099_v51  ;;  %v115_v51 = vld [vmem:[#allocation5 + $0x2e8] sm:$0xff] }
  0x67   :  { %v2101_v53 = vcombine.high %v113_v50, %v115_v51 }
  0x69   :  { %497 = vmatpush1.bf16.msra.mxu1 %v2098_v52  ;;  %v2096_v52 = vcombine.low %v109_v46, %v111_v47 }
  0x6a   :  { %498 = vmatprep.subr.bf16.mxu1 %v2103_v55  ;;  %v119_v55 = vld [vmem:[#allocation5 + $0x328] sm:$0xff] }
  0x6b   :  { %v2105_v57 = vcombine.high %v117_v54, %v119_v55 }
  0x6d   :  { %499 = vmatpush1.bf16.msra.mxu1 %v2102_v56  ;;  %v2100_v56 = vcombine.low %v113_v50, %v115_v51 }
  0x6e   :  { %500 = vmatprep.subr.bf16.mxu1 %v2107_v59  ;;  %v123_v59 = vld [vmem:[#allocation5 + $0x368] sm:$0xff] }
  0x6f   :  { %v2109_v61 = vcombine.high %v121_v58, %v123_v59 }
  0x71   :  { %501 = vmatpush1.bf16.msra.mxu1 %v2106_v60  ;;  %v2104_v60 = vcombine.low %v117_v54, %v119_v55 }
  0x72   :  { %502 = vmatprep.subr.bf16.mxu1 %v2111_v63  ;;  %v127_v63 = vld [vmem:[#allocation5 + $0x3a8] sm:$0xff] }
  0x73   :  { %v2113_v1 = vcombine.high %v125_v62, %v127_v63  ;;  %v2112_v4 = vcombine.low %v125_v62, %v127_v63 }
  0x75   :  { %503 = vmatpush1.bf16.msra.mxu1 %v2110_v0  ;;  %v2108_v0 = vcombine.low %v121_v58, %v123_v59 }
  0x76   :  { %504 = vmatprep.subr.bf16.mxu1 %v2115_v3  ;;  %v131_v3 = vld [vmem:[#allocation5 + $0x3e8] sm:$0xff] }
  0x77   :  { %v2117_v5 = vcombine.high %v129_v2, %v131_v3  ;;  %v2116_v8 = vcombine.low %v129_v2, %v131_v3 }
  0x79   :  { %505 = vmatpush1.bf16.msra.mxu1 %v2114_v6  ;;  %v636_v6 = vld [vmem:[#allocation5 + $0x10] sm:$0xff] }
  0x7a   :  { %517 = vmatprep.subr.bf16.mxu1 %v2057_v9  ;;  %v2119_v9 = vcombine.high %v636_v6, %v638_v7  ;;  %v2118_v13 = vcombine.low %v636_v6, %v638_v7 }
  0x7c   :  { %507 = vmatmul.mubr.bf16.vlgmr.msra.gmra.mrb[0].mxu1 %v2700_v10 }
  0x7d   :  { %518 = vmatpush1.bf16.msra.mxu1 %v2056_v11  ;;  %549 = vmatprep.mubr.bf16.mxu1 %v2697_v20  ;;  %v640_v11 = vld [vmem:[#allocation5 + $0x50] sm:$0xff] }
  0x7e   :  { %519 = vmatprep.subr.bf16.mxu1 %v2061_v14  ;;  %v2123_v14 = vcombine.high %v640_v11, %v642_v12  ;;  %v2122_v17 = vcombine.low %v640_v11, %v642_v12 }
  0x81   :  { %520 = vmatpush1.bf16.msra.mxu1 %v2060_v15  ;;  %v644_v15 = vld [vmem:[#allocation5 + $0x90] sm:$0xff] }
  0x82   :  { %521 = vmatprep.subr.bf16.mxu1 %v2065_v18  ;;  %v2127_v18 = vcombine.high %v644_v15, %v646_v16  ;;  %v2126_v22 = vcombine.low %v644_v15, %v646_v16 }
  0x85   :  { %522 = vmatpush1.bf16.msra.mxu1 %v2064_v19  ;;  %v648_v19 = vld [vmem:[#allocation5 + $0xd0] sm:$0xff] }
  0x86   :  { %523 = vmatprep.subr.bf16.mxu1 %v2069_v23  ;;  %v2131_v23 = vcombine.high %v648_v19, %v650_v21 }
  0x89   :  { %524 = vmatpush1.bf16.msra.mxu1 %v2068_v24  ;;  %v652_v24 = vld [vmem:[#allocation5 + $0x110] sm:$0xff] }
  0x8a   :  { %525 = vmatprep.subr.bf16.mxu1 %v2073_v26  ;;  %v2130_v26 = vcombine.low %v648_v19, %v650_v21  ;;  %v2135_v27 = vcombine.high %v652_v24, %v654_v25  ;;  %v2134_v30 = vcombine.low %v652_v24, %v654_v25 }
  0x8d   :  { %526 = vmatpush1.bf16.msra.mxu1 %v2072_v28  ;;  %v656_v28 = vld [vmem:[#allocation5 + $0x150] sm:$0xff] }
  0x8e   :  { %527 = vmatprep.subr.bf16.mxu1 %v2077_v29  ;;  %v658_v29 = vld [vmem:[#allocation5 + $0x170] sm:$0xff] }
  0x8f   :  { %v2139_v31 = vcombine.high %v656_v28, %v658_v29  ;;  %v2138_v34 = vcombine.low %v656_v28, %v658_v29 }
  0x91   :  { %528 = vmatpush1.bf16.msra.mxu1 %v2076_v32  ;;  %v660_v32 = vld [vmem:[#allocation5 + $0x190] sm:$0xff] }
  0x92   :  { %529 = vmatprep.subr.bf16.mxu1 %v2081_v33  ;;  %v662_v33 = vld [vmem:[#allocation5 + $0x1b0] sm:$0xff] }
  0x93   :  { %v2143_v35 = vcombine.high %v660_v32, %v662_v33  ;;  %v2142_v38 = vcombine.low %v660_v32, %v662_v33  ;;  %v661_v33 = vld [vmem:[#allocation5 + $0x198] sm:$0xff] }
  0x95   :  { %530 = vmatpush1.bf16.msra.mxu1 %v2080_v36  ;;  %v664_v36 = vld [vmem:[#allocation5 + $0x1d0] sm:$0xff] }
  0x96   :  { %531 = vmatprep.subr.bf16.mxu1 %v2085_v37  ;;  %v666_v37 = vld [vmem:[#allocation5 + $0x1f0] sm:$0xff] }
  0x97   :  { %v2147_v39 = vcombine.high %v664_v36, %v666_v37  ;;  %v2146_v42 = vcombine.low %v664_v36, %v666_v37  ;;  %v665_v37 = vld [vmem:[#allocation5 + $0x1d8] sm:$0xff] }
  0x99   :  { %532 = vmatpush1.bf16.msra.mxu1 %v2084_v40  ;;  %v668_v40 = vld [vmem:[#allocation5 + $0x210] sm:$0xff] }
  0x9a   :  { %533 = vmatprep.subr.bf16.mxu1 %v2089_v41  ;;  %v670_v41 = vld [vmem:[#allocation5 + $0x230] sm:$0xff] }
  0x9b   :  { %v2151_v43 = vcombine.high %v668_v40, %v670_v41  ;;  %v2150_v46 = vcombine.low %v668_v40, %v670_v41  ;;  %v669_v41 = vld [vmem:[#allocation5 + $0x218] sm:$0xff] }
  0x9d   :  { %534 = vmatpush1.bf16.msra.mxu1 %v2088_v44  ;;  %v672_v44 = vld [vmem:[#allocation5 + $0x250] sm:$0xff] }
  0x9e   :  { %535 = vmatprep.subr.bf16.mxu1 %v2093_v45  ;;  %v674_v45 = vld [vmem:[#allocation5 + $0x270] sm:$0xff] }
  0x9f   :  { %v2155_v47 = vcombine.high %v672_v44, %v674_v45  ;;  %v2154_v50 = vcombine.low %v672_v44, %v674_v45  ;;  %v673_v45 = vld [vmem:[#allocation5 + $0x258] sm:$0xff] }
  0xa1   :  { %536 = vmatpush1.bf16.msra.mxu1 %v2092_v48  ;;  %v676_v48 = vld [vmem:[#allocation5 + $0x290] sm:$0xff] }
  0xa2   :  { %537 = vmatprep.subr.bf16.mxu1 %v2097_v49  ;;  %v678_v49 = vld [vmem:[#allocation5 + $0x2b0] sm:$0xff] }
  0xa3   :  { %v2159_v51 = vcombine.high %v676_v48, %v678_v49  ;;  %v2158_v54 = vcombine.low %v676_v48, %v678_v49  ;;  %v2334_v48 = vld [vmem:[#allocation7 + $0x200] ss:$8 sps:$4 sm:$0xff]   ;;  %v2335_v49 = vld [vmem:[#allocation7 + $0x214] ss:$8 sps:$4 sm:$0xff]  }
  0xa5   :  { %538 = vmatpush1.bf16.msra.mxu1 %v2096_v52  ;;  %v680_v52 = vld [vmem:[#allocation5 + $0x2d0] sm:$0xff] }
  0xa6   :  { %539 = vmatprep.subr.bf16.mxu1 %v2101_v53  ;;  %v682_v53 = vld [vmem:[#allocation5 + $0x2f0] sm:$0xff] }
  0xa7   :  { %v2163_v55 = vcombine.high %v680_v52, %v682_v53  ;;  %v2162_v58 = vcombine.low %v680_v52, %v682_v53  ;;  %v2337_v52 = vld [vmem:[#allocation7 + $0x210] ss:$8 sps:$4 sm:$0xff]  }
  0xa8   :  { %v677_v53 = vld [vmem:[#allocation5 + $0x298] sm:$0xff] }
  0xa9   :  { %540 = vmatpush1.bf16.msra.mxu1 %v2100_v56  ;;  %v684_v56 = vld [vmem:[#allocation5 + $0x310] sm:$0xff] }
  0xaa   :  { %541 = vmatprep.subr.bf16.mxu1 %v2105_v57  ;;  %v686_v57 = vld [vmem:[#allocation5 + $0x330] sm:$0xff] }
  0xab   :  { %v2167_v59 = vcombine.high %v684_v56, %v686_v57  ;;  %v2166_v62 = vcombine.low %v684_v56, %v686_v57 }
  0xad   :  { %542 = vmatpush1.bf16.msra.mxu1 %v2104_v60  ;;  %v688_v60 = vld [vmem:[#allocation5 + $0x350] sm:$0xff] }
  0xae   :  { %543 = vmatprep.subr.bf16.mxu1 %v2109_v61  ;;  %v690_v61 = vld [vmem:[#allocation5 + $0x370] sm:$0xff] }
  0xaf   :  { %v2171_v63 = vcombine.high %v688_v60, %v690_v61  ;;  %v2170_v2 = vcombine.low %v688_v60, %v690_v61  ;;  %v683_v60 = vld [vmem:[#allocation5 + $0x2f8] sm:$0xff] }
  0xb0   :  { %v2341_v61 = vld [vmem:[#allocation7 + $0x234] ss:$8 sps:$4 sm:$0xff]  }
  0xb1   :  { %544 = vmatpush1.bf16.msra.mxu1 %v2108_v0  ;;  %v692_v0 = vld [vmem:[#allocation5 + $0x390] sm:$0xff] }
  0xb2   :  { %545 = vmatprep.subr.bf16.mxu1 %v2113_v1  ;;  %v694_v1 = vld [vmem:[#allocation5 + $0x3b0] sm:$0xff] }
  0xb3   :  { %v2175_v3 = vcombine.high %v692_v0, %v694_v1  ;;  %v2174_v6 = vcombine.low %v692_v0, %v694_v1  ;;  %v2343_v0 = vld [vmem:[#allocation7 + $0x230] ss:$8 sps:$4 sm:$0xff]  }
  0xb4   :  { %v685_v1 = vld [vmem:[#allocation5 + $0x318] sm:$0xff] }
  0xb5   :  { %546 = vmatpush1.bf16.msra.mxu1 %v2112_v4  ;;  %v696_v4 = vld [vmem:[#allocation5 + $0x3d0] sm:$0xff] }
  0xb6   :  { %547 = vmatprep.subr.bf16.mxu1 %v2117_v5  ;;  %v698_v5 = vld [vmem:[#allocation5 + $0x3f0] sm:$0xff] }
  0xb7   :  { %v2179_v7 = vcombine.high %v696_v4, %v698_v5  ;;  %v2178_v11 = vcombine.low %v696_v4, %v698_v5 }
  0xb9   :  { %548 = vmatpush1.bf16.msra.mxu1 %v2116_v8  ;;  %v637_v8 = vld [vmem:[#allocation5 + $0x18] sm:$0xff] }
  0xba   :  { %1042 = vmatprep.subr.bf16.mxu1 %v2119_v9  ;;  %v639_v9 = vld [vmem:[#allocation5 + $0x38] sm:$0xff] }
  0xbb   :  { %v2121_v12 = vcombine.high %v637_v8, %v639_v9  ;;  %v2120_v15 = vcombine.low %v637_v8, %v639_v9  ;;  %v691_v8 = vld [vmem:[#allocation5 + $0x378] sm:$0xff] }
  0xbc   :  { %550 = vmatmul.mubr.bf16.vlgmr.msra.gmra.mrb[4].mxu1 %v2700_v10  ;;  %v2347_v9 = vld [vmem:[#allocation7 + $0x254] ss:$8 sps:$4 sm:$0xff]  }
  0xbd   :  { %1043 = vmatpush1.bf16.msra.mxu1 %v2118_v13  ;;  %1074 = vmatprep.mubr.bf16.mxu1 %v2697_v20  ;;  %v641_v13 = vld [vmem:[#allocation5 + $0x58] sm:$0xff] }
  0xbe   :  { %1044 = vmatprep.subr.bf16.mxu1 %v2123_v14  ;;  %v643_v14 = vld [vmem:[#allocation5 + $0x78] sm:$0xff] }
  0xbf   :  { %v2125_v16 = vcombine.high %v641_v13, %v643_v14  ;;  %v2124_v19 = vcombine.low %v641_v13, %v643_v14  ;;  %v2349_v13 = vld [vmem:[#allocation7 + $0x250] ss:$8 sps:$4 sm:$0xff]  }
  0xc0   :  { %v693_v14 = vld [vmem:[#allocation5 + $0x398] sm:$0xff] }
  0xc1   :  { %1045 = vmatpush1.bf16.msra.mxu1 %v2122_v17  ;;  %v645_v17 = vld [vmem:[#allocation5 + $0x98] sm:$0xff] }
  0xc2   :  { %1046 = vmatprep.subr.bf16.mxu1 %v2127_v18  ;;  %v647_v18 = vld [vmem:[#allocation5 + $0xb8] sm:$0xff] }
  0xc3   :  { %v2129_v21 = vcombine.high %v645_v17, %v647_v18  ;;  %v2128_v24 = vcombine.low %v645_v17, %v647_v18 }
  0xc5   :  { %1047 = vmatpush1.bf16.msra.mxu1 %v2126_v22  ;;  %v649_v22 = vld [vmem:[#allocation5 + $0xd8] sm:$0xff] }
  0xc6   :  { %1048 = vmatprep.subr.bf16.mxu1 %v2131_v23  ;;  %v651_v23 = vld [vmem:[#allocation5 + $0xf8] sm:$0xff] }
  0xc7   :  { %v2133_v25 = vcombine.high %v649_v22, %v651_v23  ;;  %v2132_v28 = vcombine.low %v649_v22, %v651_v23  ;;  %v699_v22 = vld [vmem:[#allocation5 + $0x3f8] sm:$0xff] }
  0xc8   :  { %v2353_v23 = vld [vmem:[#allocation7 + $0x274] ss:$8 sps:$4 sm:$0xff]  }
  0xc9   :  { %1049 = vmatpush1.bf16.msra.mxu1 %v2130_v26  ;;  %v653_v26 = vld [vmem:[#allocation5 + $0x118] sm:$0xff] }
  0xca   :  { %1050 = vmatprep.subr.bf16.mxu1 %v2135_v27  ;;  %v655_v27 = vld [vmem:[#allocation5 + $0x138] sm:$0xff] }
  0xcb   :  { %v2137_v29 = vcombine.high %v653_v26, %v655_v27  ;;  %v2136_v32 = vcombine.low %v653_v26, %v655_v27  ;;  %v2355_v26 = vld [vmem:[#allocation7 + $0x270] ss:$8 sps:$4 sm:$0xff]   ;;  %v2356_v27 = vld [vmem:[#allocation7 + $0x284] ss:$8 sps:$4 sm:$0xff]  }
  0xcd   :  { %1051 = vmatpush1.bf16.msra.mxu1 %v2134_v30  ;;  %v657_v30 = vld [vmem:[#allocation5 + $0x158] sm:$0xff] }
  0xce   :  { %1052 = vmatprep.subr.bf16.mxu1 %v2139_v31  ;;  %v659_v31 = vld [vmem:[#allocation5 + $0x178] sm:$0xff] }
  0xd1   :  { %1053 = vmatpush1.bf16.msra.mxu1 %v2138_v34  ;;  %v663_v34 = vld [vmem:[#allocation5 + $0x1b8] sm:$0xff] }
  0xd2   :  { %1054 = vmatprep.subr.bf16.mxu1 %v2143_v35  ;;  %v2140_v35 = vcombine.low %v657_v30, %v659_v31  ;;  %v2145_v36 = vcombine.high %v661_v33, %v663_v34 }
  0xd5   :  { %1055 = vmatpush1.bf16.msra.mxu1 %v2142_v38  ;;  %v667_v38 = vld [vmem:[#allocation5 + $0x1f8] sm:$0xff] }
  0xd6   :  { %1056 = vmatprep.subr.bf16.mxu1 %v2147_v39  ;;  %v2144_v39 = vcombine.low %v661_v33, %v663_v34  ;;  %v2149_v40 = vcombine.high %v665_v37, %v667_v38  ;;  %v2365_v33 = vld [vmem:[#allocation7 + $0x2b4] ss:$8 sps:$4 sm:$0xff]   ;;  %v134_v34 = vlaneseq }
  0xd9   :  { %1057 = vmatpush1.bf16.msra.mxu1 %v2146_v42  ;;  %v671_v42 = vld [vmem:[#allocation5 + $0x238] sm:$0xff] }
  0xda   :  { %1058 = vmatprep.subr.bf16.mxu1 %v2151_v43  ;;  %v2148_v43 = vcombine.low %v665_v37, %v667_v38  ;;  %v2153_v44 = vcombine.high %v669_v41, %v671_v42  ;;  %v2709_v37 = vshrl.u32 %v134_v34, 7  ;;  %v2370_v38 = vld [vmem:[#allocation7 + $0x2c0] ss:$8 sps:$4 sm:$0xff]  }
  0xdd   :  { %1059 = vmatpush1.bf16.msra.mxu1 %v2150_v46  ;;  %v675_v46 = vld [vmem:[#allocation5 + $0x278] sm:$0xff] }
  0xde   :  { %1060 = vmatprep.subr.bf16.mxu1 %v2155_v47  ;;  %v2332_v47 = vld [vmem:[#allocation7 + $0x204] ss:$8 sps:$4 sm:$0xff]   ;;  %v2156_v56 = vcombine.low %v673_v45, %v675_v46 }
  0xdf   :  { %1524 = vmatprep.subr.bf16.mxu0 %v2332_v47 }
  0xe0   :  { %1525 = vmatpush1.bf16.msra.mxu0 %v2334_v48 }
  0xe1   :  { %1061 = vmatpush1.bf16.msra.mxu1 %v2154_v50  ;;  %v2152_v50 = vcombine.low %v669_v41, %v671_v42  ;;  %1526 = vmatprep.subr.bf16.mxu0 %v2335_v49  ;;  %v2718_v41 = vsub.s32 1, %v2709_v37  ;;  %v2373_v42 = vld [vmem:[#allocation7 + $0x2d0] ss:$8 sps:$4 sm:$0xff]   ;;  %v2376_v49 = vld [vmem:[#allocation7 + $0x2e0] ss:$8 sps:$4 sm:$0xff]  }
  0xe2   :  { %1062 = vmatprep.subr.bf16.mxu1 %v2159_v51  ;;  %v2157_v51 = vcombine.high %v673_v45, %v675_v46  ;;  %v2374_v46 = vld [vmem:[#allocation7 + $0x2e4] ss:$8 sps:$4 sm:$0xff]  }
  0xe4   :  { %1527 = vmatpush1.bf16.msra.mxu0 %v2337_v52 }
  0xe5   :  { %1063 = vmatpush1.bf16.msra.mxu1 %v2158_v54  ;;  %v679_v54 = vld [vmem:[#allocation5 + $0x2b8] sm:$0xff] }
  0xe6   :  { %1064 = vmatprep.subr.bf16.mxu1 %v2163_v55  ;;  %v2338_v55 = vld [vmem:[#allocation7 + $0x224] ss:$8 sps:$4 sm:$0xff]   ;;  %v2161_v57 = vcombine.high %v677_v53, %v679_v54 }
  0xe7   :  { %1528 = vmatprep.subr.bf16.mxu0 %v2338_v55 }
  0xe9   :  { %1065 = vmatpush1.bf16.msra.mxu1 %v2162_v58  ;;  %v2340_v58 = vld [vmem:[#allocation7 + $0x220] ss:$8 sps:$4 sm:$0xff]  }
  0xea   :  { %1066 = vmatprep.subr.bf16.mxu1 %v2167_v59  ;;  %v681_v59 = vld [vmem:[#allocation5 + $0x2d8] sm:$0xff]  ;;  %1529 = vmatpush1.bf16.msra.mxu0 %v2340_v58 }
  0xeb   :  { %1530 = vmatprep.subr.bf16.mxu0 %v2341_v61  ;;  %v2164_v4 = vcombine.low %v681_v59, %v683_v60  ;;  %v2379_v58 = vld [vmem:[#allocation7 + $0x2f0] ss:$8 sps:$4 sm:$0xff]  }
  0xed   :  { %1067 = vmatpush1.bf16.msra.mxu1 %v2166_v62  ;;  %v2160_v62 = vcombine.low %v677_v53, %v679_v54 }
  0xee   :  { %1068 = vmatprep.subr.bf16.mxu1 %v2171_v63  ;;  %v2165_v63 = vcombine.high %v681_v59, %v683_v60  ;;  %1531 = vmatpush1.bf16.msra.mxu0 %v2343_v0  ;;  %v144_v0 = vsub.s32 2, %v2709_v37 }
  0xf1   :  { %1069 = vmatpush1.bf16.msra.mxu1 %v2170_v2  ;;  %v687_v2 = vld [vmem:[#allocation5 + $0x338] sm:$0xff] }
  0xf2   :  { %1070 = vmatprep.subr.bf16.mxu1 %v2175_v3  ;;  %v2344_v3 = vld [vmem:[#allocation7 + $0x244] ss:$8 sps:$4 sm:$0xff]   ;;  %v2169_v5 = vcombine.high %v685_v1, %v687_v2 }
  0xf3   :  { %1532 = vmatprep.subr.bf16.mxu0 %v2344_v3 }
  0xf5   :  { %1071 = vmatpush1.bf16.msra.mxu1 %v2174_v6  ;;  %v2346_v6 = vld [vmem:[#allocation7 + $0x240] ss:$8 sps:$4 sm:$0xff]  }
  0xf6   :  { %1072 = vmatprep.subr.bf16.mxu1 %v2179_v7  ;;  %v689_v7 = vld [vmem:[#allocation5 + $0x358] sm:$0xff]  ;;  %1533 = vmatpush1.bf16.msra.mxu0 %v2346_v6 }
  0xf7   :  { %1534 = vmatprep.subr.bf16.mxu0 %v2347_v9  ;;  %v2172_v17 = vcombine.low %v689_v7, %v691_v8 }
  0xf9   :  { %1073 = vmatpush1.bf16.msra.mxu1 %v2178_v11  ;;  %v2168_v11 = vcombine.low %v685_v1, %v687_v2  ;;  %v148_v1 = vsub.s32 3, %v2709_v37 }
  0xfa   :  { %1085 = vmatprep.subr.bf16.mxu1 %v2121_v12  ;;  %v2173_v12 = vcombine.high %v689_v7, %v691_v8  ;;  %1535 = vmatpush1.bf16.msra.mxu0 %v2349_v13 }
  0xfc   :  { %1075 = vmatmul.mubr.bf16.vlgmr.msra.gmra.mrb[8].mxu1 %v2700_v10 }
  0xfd   :  { %1086 = vmatpush1.bf16.msra.mxu1 %v2120_v15  ;;  %1117 = vmatprep.mubr.bf16.mxu1 %v2697_v20  ;;  %v2141_v20 = vcombine.high %v657_v30, %v659_v31  ;;  %v695_v15 = vld [vmem:[#allocation5 + $0x3b8] sm:$0xff] }
  0xfe   :  { %1087 = vmatprep.subr.bf16.mxu1 %v2125_v16  ;;  %v2350_v16 = vld [vmem:[#allocation7 + $0x264] ss:$8 sps:$4 sm:$0xff]   ;;  %v2177_v18 = vcombine.high %v693_v14, %v695_v15  ;;  %v2359_v30 = vld [vmem:[#allocation7 + $0x294] ss:$8 sps:$4 sm:$0xff]   ;;  %v2361_v31 = vld [vmem:[#allocation7 + $0x290] ss:$8 sps:$4 sm:$0xff]  }
  0xff   :  { %1536 = vmatprep.subr.bf16.mxu0 %v2350_v16 }
 0x101   :  { %1088 = vmatpush1.bf16.msra.mxu1 %v2124_v19  ;;  %v2352_v19 = vld [vmem:[#allocation7 + $0x260] ss:$8 sps:$4 sm:$0xff]  }
 0x102   :  { %1089 = vmatprep.subr.bf16.mxu1 %v2129_v21  ;;  %v697_v21 = vld [vmem:[#allocation5 + $0x3d8] sm:$0xff]  ;;  %1537 = vmatpush1.bf16.msra.mxu0 %v2352_v19  ;;  %v2739_v19 = vld [vmem:[%s2777_s2 + $0x4] sm:$0xf] }
 0x103   :  { %1538 = vmatprep.subr.bf16.mxu0 %v2353_v23 }
 0x105   :  { %1090 = vmatpush1.bf16.msra.mxu1 %v2128_v24  ;;  %v2176_v24 = vcombine.low %v693_v14, %v695_v15 }
 0x106   :  { %1091 = vmatprep.subr.bf16.mxu1 %v2133_v25  ;;  %v2181_v25 = vcombine.high %v697_v21, %v699_v22  ;;  %1539 = vmatpush1.bf16.msra.mxu0 %v2355_v26 }
 0x107   :  { %1540 = vmatprep.subr.bf16.mxu0 %v2356_v27 }
 0x109   :  { %1092 = vmatpush1.bf16.msra.mxu1 %v2132_v28  ;;  %v2180_v28 = vcombine.low %v697_v21, %v699_v22  ;;  %v709_v22 = vrot.slane %v2739_v19, %v2718_v41 }
 0x10a   :  { %1093 = vmatprep.subr.bf16.mxu1 %v2137_v29  ;;  %v2358_v29 = vld [vmem:[#allocation7 + $0x280] ss:$8 sps:$4 sm:$0xff]  }
 0x10b   :  { %1541 = vmatpush1.bf16.msra.mxu0 %v2358_v29 }
 0x10c   :  { %1542 = vmatprep.subr.bf16.mxu0 %v2359_v30 }
 0x10d   :  { %1094 = vmatpush1.bf16.msra.mxu1 %v2136_v32  ;;  %v2362_v32 = vld [vmem:[#allocation7 + $0x2a4] ss:$8 sps:$4 sm:$0xff]  }
 0x10e   :  { %1095 = vmatprep.subr.bf16.mxu1 %v2141_v20  ;;  %v2364_v20 = vld [vmem:[#allocation7 + $0x2a0] ss:$8 sps:$4 sm:$0xff]  }
 0x10f   :  { %1543 = vmatpush1.bf16.msra.mxu0 %v2361_v31 }
 0x110   :  { %1544 = vmatprep.subr.bf16.mxu0 %v2362_v32 }
 0x111   :  { %1096 = vmatpush1.bf16.msra.mxu1 %v2140_v35  ;;  %v2367_v35 = vld [vmem:[#allocation7 + $0x2b0] ss:$8 sps:$4 sm:$0xff]  }
 0x112   :  { %1097 = vmatprep.subr.bf16.mxu1 %v2145_v36  ;;  %v2368_v36 = vld [vmem:[#allocation7 + $0x2c4] ss:$8 sps:$4 sm:$0xff]  }
 0x113   :  { %1545 = vmatpush1.bf16.msra.mxu0 %v2364_v20 }
 0x114   :  { %1546 = vmatprep.subr.bf16.mxu0 %v2365_v33 }
 0x115   :  { %1098 = vmatpush1.bf16.msra.mxu1 %v2144_v39  ;;  %v2371_v39 = vld [vmem:[#allocation7 + $0x2d4] ss:$8 sps:$4 sm:$0xff]  }
 0x116   :  { %1099 = vmatprep.subr.bf16.mxu1 %v2149_v40  ;;  %v2712_v40 = vsub.s32 0, %v2709_v37  ;;  %v2430_v37 = vld [vmem:[#allocation7 + $0x4] ss:$8 sps:$4 sm:$0xff]  }
 0x117   :  { %1547 = vmatpush1.bf16.msra.mxu0 %v2367_v35 }
 0x118   :  { %1548 = vmatprep.subr.bf16.mxu0 %v2368_v36  ;;  %v705_v21 = vrot.slane %v2739_v19, %v2712_v40  ;;  %v2380_v36 = vld [vmem:[#allocation7 + $0x300] ss:$8 sps:$4 sm:$0xff]  }
 0x119   :  { %1100 = vmatpush1.bf16.msra.mxu1 %v2148_v43 }
 0x11a   :  { %1101 = vmatprep.subr.bf16.mxu1 %v2153_v44 }
 0x11b   :  { %1549 = vmatpush1.bf16.msra.mxu0 %v2370_v38  ;;  %v2385_v38 = vld [vmem:[#allocation7 + $0x314] ss:$8 sps:$4 sm:$0xff]  }
 0x11c   :  { %1550 = vmatprep.subr.bf16.mxu0 %v2371_v39  ;;  %v2383_v39 = vld [vmem:[#allocation7 + $0x310] ss:$8 sps:$4 sm:$0xff]  }
 0x11d   :  { %1102 = vmatpush1.bf16.msra.mxu1 %v2152_v50 }
 0x11e   :  { %1103 = vmatprep.subr.bf16.mxu1 %v2157_v51 }
 0x11f   :  { %1551 = vmatpush1.bf16.msra.mxu0 %v2373_v42  ;;  %v2386_v42 = vld [vmem:[#allocation7 + $0x320] ss:$8 sps:$4 sm:$0xff]  }
 0x120   :  { %1552 = vmatprep.subr.bf16.mxu0 %v2374_v46  ;;  %v2392_v46 = vld [vmem:[#allocation7 + $0x340] ss:$8 sps:$4 sm:$0xff]  }
 0x121   :  { %1104 = vmatpush1.bf16.msra.mxu1 %v2156_v56  ;;  %v2377_v56 = vld [vmem:[#allocation7 + $0x2f4] ss:$8 sps:$4 sm:$0xff]  }
 0x122   :  { %1105 = vmatprep.subr.bf16.mxu1 %v2161_v57 }
 0x123   :  { %1553 = vmatpush1.bf16.msra.mxu0 %v2376_v49  ;;  %v2400_v49 = vld [vmem:[#allocation7 + $0x364] ss:$8 sps:$4 sm:$0xff]  }
 0x124   :  { %1554 = vmatprep.subr.bf16.mxu0 %v2377_v56  ;;  %v2407_v56 = vld [vmem:[#allocation7 + $0x390] ss:$8 sps:$4 sm:$0xff]  }
 0x125   :  { %1106 = vmatpush1.bf16.msra.mxu1 %v2160_v62 }
 0x126   :  { %1107 = vmatprep.subr.bf16.mxu1 %v2165_v63  ;;  %v2382_v63 = vld [vmem:[#allocation7 + $0x304] ss:$8 sps:$4 sm:$0xff]  }
 0x127   :  { %1555 = vmatpush1.bf16.msra.mxu0 %v2379_v58  ;;  %v2410_v58 = vld [vmem:[#allocation7 + $0x3a0] ss:$8 sps:$4 sm:$0xff]  }
 0x128   :  { %1567 = vmatprep.subr.bf16.mxu0 %v2382_v63  ;;  %v2418_v63 = vld [vmem:[#allocation7 + $0x3c4] ss:$8 sps:$4 sm:$0xff]  }
 0x129   :  { %1108 = vmatpush1.bf16.msra.mxu1 %v2164_v4 }
 0x12a   :  { %1109 = vmatprep.subr.bf16.mxu1 %v2169_v5 }
 0x12d   :  { %1110 = vmatpush1.bf16.msra.mxu1 %v2168_v11 }
 0x12e   :  { %1111 = vmatprep.subr.bf16.mxu1 %v2173_v12 }
 0x131   :  { %1112 = vmatpush1.bf16.msra.mxu1 %v2172_v17 }
 0x132   :  { %1113 = vmatprep.subr.bf16.mxu1 %v2177_v18 }
 0x135   :  { %1114 = vmatpush1.bf16.msra.mxu1 %v2176_v24 }
 0x136   :  { %1115 = vmatprep.subr.bf16.mxu1 %v2181_v25 }
 0x139   :  { %1116 = vmatpush1.bf16.msra.mxu1 %v2180_v28 }
 0x13c   :  { %1118 = vmatmul.mubr.bf16.vlgmr.msra.gmra.mrb[12].mxu1 %v2700_v10  ;;  %v132_v10 = vld [vmem:[%s2777_s2] sm:$0xf] }
 0x13d   :  { %v137_v43 = vrot.slane %v132_v10, %v2712_v40  ;;  %v141_v44 = vrot.slane %v132_v10, %v2718_v41  ;;  %v145_v2 = vrot.slane %v132_v10, %v144_v0  ;;  %v149_v3 = vrot.slane %v132_v10, %v148_v1  ;;  %v2388_v10 = vld [vmem:[#allocation7 + $0x324] ss:$8 sps:$4 sm:$0xff]  }
 0x14f   :  { %v508_v45 = vpop.f32.mrb[0].mxu1 }
 0x150   :  { %v509_v47 = vadd.f32 %v508_v45, %v137_v43  ;;  %v510_v48 = vpop.f32.mrb[1].mxu1  ;;  %v2394_v45 = vld [vmem:[#allocation7 + $0x344] ss:$8 sps:$4 sm:$0xff]  }
 0x151   :  { %v511_v50 = vadd.f32 %v510_v48, %v141_v44  ;;  %v512_v51 = vpop.f32.mrb[2].mxu1  ;;  %v2395_v48 = vld [vmem:[#allocation7 + $0x350] ss:$8 sps:$4 sm:$0xff]  }
 0x152   :  { %v560_v52 = vmax.f32 %v509_v47, 0.0  ;;  %v513_v53 = vadd.f32 %v512_v51, %v137_v43  ;;  %v514_v54 = vpop.f32.mrb[3].mxu1  ;;  %v2391_v43 = vld [vmem:[#allocation7 + $0x334] ss:$8 sps:$4 sm:$0xff]  }
 0x153   :  { %v515_v55 = vadd.f32 %v514_v54, %v141_v44  ;;  %v561_v59 = vmax.f32 %v511_v50, 0.0  ;;  %v2389_v44 = vld [vmem:[#allocation7 + $0x330] ss:$8 sps:$4 sm:$0xff]   ;;  %v2397_v47 = vld [vmem:[#allocation7 + $0x354] ss:$8 sps:$4 sm:$0xff]  }
 0x154   :  { %v564_v57 = vmax.f32 %v513_v53, 0.0  ;;  %v2398_v50 = vld [vmem:[#allocation7 + $0x360] ss:$8 sps:$4 sm:$0xff]   ;;  %v2403_v51 = vld [vmem:[#allocation7 + $0x374] ss:$8 sps:$4 sm:$0xff]  }
 0x155   :  { %v565_v60 = vmax.f32 %v515_v55, 0.0  ;;  %v2406_v53 = vld [vmem:[#allocation7 + $0x384] ss:$8 sps:$4 sm:$0xff]   ;;  %v2404_v54 = vld [vmem:[#allocation7 + $0x380] ss:$8 sps:$4 sm:$0xff]  }
 0x156   :  { %v2722_v61 = vpack.c.bf16 %v564_v57, %v560_v52  ;;  %v2401_v52 = vld [vmem:[#allocation7 + $0x370] ss:$8 sps:$4 sm:$0xff]   ;;  %v2409_v55 = vld [vmem:[#allocation7 + $0x394] ss:$8 sps:$4 sm:$0xff]   ;;  %v2412_v57 = vld [vmem:[#allocation7 + $0x3a4] ss:$8 sps:$4 sm:$0xff]  }
 0x157   :  { %v2724_v62 = vpack.c.bf16 %v565_v60, %v561_v59  ;;  %v2415_v59 = vld [vmem:[#allocation7 + $0x3b4] ss:$8 sps:$4 sm:$0xff]   ;;  %v2413_v60 = vld [vmem:[#allocation7 + $0x3b0] ss:$8 sps:$4 sm:$0xff]  }
 0x18f   :  { %v551_v4 = vpop.f32.mrb[4].mxu1 }
 0x190   :  { %v552_v5 = vadd.f32 %v551_v4, %v145_v2  ;;  %v553_v6 = vpop.f32.mrb[5].mxu1  ;;  %v2419_v4 = vld [vmem:[#allocation7 + $0x3d0] ss:$8 sps:$4 sm:$0xff]  }
 0x191   :  { %v554_v7 = vadd.f32 %v553_v6, %v149_v3  ;;  %v555_v8 = vpop.f32.mrb[6].mxu1  ;;  %v2424_v6 = vld [vmem:[#allocation7 + $0x3e4] ss:$8 sps:$4 sm:$0xff]  }
 0x192   :  { %v562_v9 = vmax.f32 %v552_v5, 0.0  ;;  %v556_v11 = vadd.f32 %v555_v8, %v145_v2  ;;  %v557_v12 = vpop.f32.mrb[7].mxu1  ;;  %v2416_v2 = vld [vmem:[#allocation7 + $0x3c0] ss:$8 sps:$4 sm:$0xff]   ;;  %v713_v5 = vrot.slane %v2739_v19, %v144_v0 }
 0x193   :  { %v558_v13 = vadd.f32 %v557_v12, %v149_v3  ;;  %v563_v15 = vmax.f32 %v554_v7, 0.0  ;;  %v2421_v3 = vld [vmem:[#allocation7 + $0x3d4] ss:$8 sps:$4 sm:$0xff]   ;;  %v717_v7 = vrot.slane %v2739_v19, %v148_v1 }
 0x194   :  { %v566_v14 = vmax.f32 %v556_v11, 0.0 }
 0x195   :  { %v567_v16 = vmax.f32 %v558_v13, 0.0  ;;  %v2427_v13 = vld [vmem:[#allocation7 + $0x3f4] ss:$8 sps:$4 sm:$0xff]  }
 0x196   :  { %v2732_v17 = vpack.c.bf16 %v566_v14, %v562_v9  ;;  %v2422_v9 = vld [vmem:[#allocation7 + $0x3e0] ss:$8 sps:$4 sm:$0xff]  }
 0x197   :  { %v2734_v18 = vpack.c.bf16 %v567_v16, %v563_v15 }
 0x1cf   :  { %v1076_v23 = vpop.f32.mrb[8].mxu1 }
 0x1d0   :  { %v1077_v24 = vadd.f32 %v1076_v23, %v705_v21  ;;  %v1078_v25 = vpop.f32.mrb[9].mxu1  ;;  %v2425_v23 = vld [vmem:[#allocation7 + $0x3f0] ss:$8 sps:$4 sm:$0xff]  }
 0x1d1   :  { %v1079_v26 = vadd.f32 %v1078_v25, %v709_v22  ;;  %v1080_v27 = vpop.f32.mrb[10].mxu1 }
 0x1d2   :  { %v1081_v28 = vadd.f32 %v1080_v27, %v705_v21  ;;  %v1082_v29 = vpop.f32.mrb[11].mxu1  ;;  %v1128_v31 = vmax.f32 %v1077_v24, 0.0  ;;  %v2428_v27 = vld [vmem:[#allocation7] ss:$8 sps:$4 sm:$0xff]  }
 0x1d3   :  { %v1083_v30 = vadd.f32 %v1082_v29, %v709_v22  ;;  %v1129_v20 = vmax.f32 %v1079_v26, 0.0  ;;  %v2431_v29 = vld [vmem:[#allocation7 + $0x10] ss:$8 sps:$4 sm:$0xff]  }
 0x1d4   :  { %v1132_v32 = vmax.f32 %v1081_v28, 0.0  ;;  %v2433_v28 = vld [vmem:[#allocation7 + $0x14] ss:$8 sps:$4 sm:$0xff]  }
 0x1d5   :  { %v1133_v33 = vmax.f32 %v1083_v30, 0.0  ;;  %v2436_v30 = vld [vmem:[#allocation7 + $0x24] ss:$8 sps:$4 sm:$0xff]  }
 0x1d6   :  { %v1136_v34 = vpack.c.bf16 %v1132_v32, %v1128_v31  ;;  %v2434_v31 = vld [vmem:[#allocation7 + $0x20] ss:$8 sps:$4 sm:$0xff]   ;;  %v2439_v32 = vld [vmem:[#allocation7 + $0x34] ss:$8 sps:$4 sm:$0xff]  }
 0x1d7   :  { %v1137_v35 = vpack.c.bf16 %v1133_v33, %v1129_v20  ;;  %v2437_v20 = vld [vmem:[#allocation7 + $0x30] ss:$8 sps:$4 sm:$0xff]   ;;  %v2442_v33 = vld [vmem:[#allocation7 + $0x44] ss:$8 sps:$4 sm:$0xff]  }
 0x1d9   :  { %1556 = vmatprep.mubr.bf16.mxu0 %v1137_v35  ;;  %v2445_v35 = vld [vmem:[#allocation7 + $0x54] ss:$8 sps:$4 sm:$0xff]  }
 0x1da   :  { %1557 = vmatmul.mubr.bf16.vlgmr.msra.gmra.mrb[0].mxu0 %v1136_v34  ;;  %v2440_v34 = vld [vmem:[#allocation7 + $0x40] ss:$8 sps:$4 sm:$0xff]  }
 0x1db   :  { %1568 = vmatpush1.bf16.msra.mxu0 %v2380_v36  ;;  %v2443_v36 = vld [vmem:[#allocation7 + $0x50] ss:$8 sps:$4 sm:$0xff]  }
 0x1dc   :  { %1569 = vmatprep.subr.bf16.mxu0 %v2385_v38  ;;  %v2448_v38 = vld [vmem:[#allocation7 + $0x64] ss:$8 sps:$4 sm:$0xff]  }
 0x1df   :  { %1570 = vmatpush1.bf16.msra.mxu0 %v2383_v39  ;;  %v2451_v39 = vld [vmem:[#allocation7 + $0x74] ss:$8 sps:$4 sm:$0xff]  }
 0x1e0   :  { %1571 = vmatprep.subr.bf16.mxu0 %v2388_v10  ;;  %v2449_v10 = vld [vmem:[#allocation7 + $0x70] ss:$8 sps:$4 sm:$0xff]  }
 0x1e3   :  { %1572 = vmatpush1.bf16.msra.mxu0 %v2386_v42  ;;  %v2454_v42 = vld [vmem:[#allocation7 + $0x84] ss:$8 sps:$4 sm:$0xff]  }
 0x1e4   :  { %1573 = vmatprep.subr.bf16.mxu0 %v2391_v43  ;;  %v2452_v43 = vld [vmem:[#allocation7 + $0x80] ss:$8 sps:$4 sm:$0xff]  }
 0x1e7   :  { %1574 = vmatpush1.bf16.msra.mxu0 %v2389_v44  ;;  %v2457_v44 = vld [vmem:[#allocation7 + $0x94] ss:$8 sps:$4 sm:$0xff]  }
 0x1e8   :  { %1575 = vmatprep.subr.bf16.mxu0 %v2394_v45  ;;  %v2455_v45 = vld [vmem:[#allocation7 + $0x90] ss:$8 sps:$4 sm:$0xff]  }
 0x1eb   :  { %1576 = vmatpush1.bf16.msra.mxu0 %v2392_v46  ;;  %v2460_v46 = vld [vmem:[#allocation7 + $0xa4] ss:$8 sps:$4 sm:$0xff]  }
 0x1ec   :  { %1577 = vmatprep.subr.bf16.mxu0 %v2397_v47  ;;  %v2458_v47 = vld [vmem:[#allocation7 + $0xa0] ss:$8 sps:$4 sm:$0xff]  }
 0x1ef   :  { %1578 = vmatpush1.bf16.msra.mxu0 %v2395_v48  ;;  %v2463_v48 = vld [vmem:[#allocation7 + $0xb4] ss:$8 sps:$4 sm:$0xff]  }
 0x1f0   :  { %1579 = vmatprep.subr.bf16.mxu0 %v2400_v49  ;;  %v2461_v49 = vld [vmem:[#allocation7 + $0xb0] ss:$8 sps:$4 sm:$0xff]  }
 0x1f3   :  { %1580 = vmatpush1.bf16.msra.mxu0 %v2398_v50  ;;  %v2466_v50 = vld [vmem:[#allocation7 + $0xc4] ss:$8 sps:$4 sm:$0xff]  }
 0x1f4   :  { %1581 = vmatprep.subr.bf16.mxu0 %v2403_v51  ;;  %v2464_v51 = vld [vmem:[#allocation7 + $0xc0] ss:$8 sps:$4 sm:$0xff]  }
 0x1f7   :  { %1582 = vmatpush1.bf16.msra.mxu0 %v2401_v52  ;;  %v2469_v52 = vld [vmem:[#allocation7 + $0xd4] ss:$8 sps:$4 sm:$0xff]  }
 0x1f8   :  { %1583 = vmatprep.subr.bf16.mxu0 %v2406_v53  ;;  %v2467_v53 = vld [vmem:[#allocation7 + $0xd0] ss:$8 sps:$4 sm:$0xff]  }
 0x1fb   :  { %1584 = vmatpush1.bf16.msra.mxu0 %v2404_v54  ;;  %v2472_v54 = vld [vmem:[#allocation7 + $0xe4] ss:$8 sps:$4 sm:$0xff]  }
 0x1fc   :  { %1585 = vmatprep.subr.bf16.mxu0 %v2409_v55  ;;  %v2470_v55 = vld [vmem:[#allocation7 + $0xe0] ss:$8 sps:$4 sm:$0xff]  }
 0x1ff   :  { %1586 = vmatpush1.bf16.msra.mxu0 %v2407_v56  ;;  %v2475_v56 = vld [vmem:[#allocation7 + $0xf4] ss:$8 sps:$4 sm:$0xff]  }
 0x200   :  { %1587 = vmatprep.subr.bf16.mxu0 %v2412_v57  ;;  %v2473_v57 = vld [vmem:[#allocation7 + $0xf0] ss:$8 sps:$4 sm:$0xff]  }
 0x203   :  { %1588 = vmatpush1.bf16.msra.mxu0 %v2410_v58  ;;  %v2478_v58 = vld [vmem:[#allocation7 + $0x104] ss:$8 sps:$4 sm:$0xff]  }
 0x204   :  { %1589 = vmatprep.subr.bf16.mxu0 %v2415_v59  ;;  %v2476_v59 = vld [vmem:[#allocation7 + $0x100] ss:$8 sps:$4 sm:$0xff]  }
 0x207   :  { %1590 = vmatpush1.bf16.msra.mxu0 %v2413_v60  ;;  %v2481_v60 = vld [vmem:[#allocation7 + $0x114] ss:$8 sps:$4 sm:$0xff]  }
 0x208   :  { %1591 = vmatprep.subr.bf16.mxu0 %v2418_v63  ;;  %v2479_v63 = vld [vmem:[#allocation7 + $0x110] ss:$8 sps:$4 sm:$0xff]  }
 0x20b   :  { %1592 = vmatpush1.bf16.msra.mxu0 %v2416_v2  ;;  %v2484_v2 = vld [vmem:[#allocation7 + $0x124] ss:$8 sps:$4 sm:$0xff]  }
 0x20c   :  { %1593 = vmatprep.subr.bf16.mxu0 %v2421_v3  ;;  %v2482_v3 = vld [vmem:[#allocation7 + $0x120] ss:$8 sps:$4 sm:$0xff]  }
 0x20f   :  { %1594 = vmatpush1.bf16.msra.mxu0 %v2419_v4  ;;  %v1119_v8 = vpop.f32.mrb[12].mxu1  ;;  %v2487_v4 = vld [vmem:[#allocation7 + $0x134] ss:$8 sps:$4 sm:$0xff]  }
 0x210   :  { %v1120_v11 = vadd.f32 %v1119_v8, %v713_v5  ;;  %v1121_v12 = vpop.f32.mrb[13].mxu1  ;;  %1595 = vmatprep.subr.bf16.mxu0 %v2424_v6  ;;  %v2490_v6 = vld [vmem:[#allocation7 + $0x144] ss:$8 sps:$4 sm:$0xff]   ;;  %v2493_v8 = vld [vmem:[#allocation7 + $0x154] ss:$8 sps:$4 sm:$0xff]  }
 0x211   :  { %v1122_v14 = vadd.f32 %v1121_v12, %v717_v7  ;;  %v1123_v15 = vpop.f32.mrb[14].mxu1  ;;  %v2497_v12 = vld [vmem:[#allocation7 + $0x170] ss:$8 sps:$4 sm:$0xff]  }
 0x212   :  { %v1124_v16 = vadd.f32 %v1123_v15, %v713_v5  ;;  %v1125_v21 = vpop.f32.mrb[15].mxu1  ;;  %v1130_v0 = vmax.f32 %v1120_v11, 0.0  ;;  %v2485_v5 = vld [vmem:[#allocation7 + $0x130] ss:$8 sps:$4 sm:$0xff]   ;;  %v2499_v11 = vld [vmem:[#allocation7 + $0x174] ss:$8 sps:$4 sm:$0xff]  }
 0x213   :  { %v1126_v22 = vadd.f32 %v1125_v21, %v717_v7  ;;  %1596 = vmatpush1.bf16.msra.mxu0 %v2422_v9  ;;  %v1131_v25 = vmax.f32 %v1122_v14, 0.0  ;;  %v2488_v7 = vld [vmem:[#allocation7 + $0x140] ss:$8 sps:$4 sm:$0xff]   ;;  %v2496_v9 = vld [vmem:[#allocation7 + $0x164] ss:$8 sps:$4 sm:$0xff]  }
 0x214   :  { %v1134_v24 = vmax.f32 %v1124_v16, 0.0  ;;  %1597 = vmatprep.subr.bf16.mxu0 %v2427_v13  ;;  %v2502_v13 = vld [vmem:[#allocation7 + $0x184] ss:$8 sps:$4 sm:$0xff]   ;;  %v2500_v14 = vld [vmem:[#allocation7 + $0x180] ss:$8 sps:$4 sm:$0xff]  }
 0x215   :  { %v1135_v1 = vmax.f32 %v1126_v22, 0.0  ;;  %v2505_v15 = vld [vmem:[#allocation7 + $0x194] ss:$8 sps:$4 sm:$0xff]   ;;  %v2503_v16 = vld [vmem:[#allocation7 + $0x190] ss:$8 sps:$4 sm:$0xff]  }
 0x216   :  { %v1138_v19 = vpack.c.bf16 %v1134_v24, %v1130_v0  ;;  %v2508_v21 = vld [vmem:[#allocation7 + $0x1a4] ss:$8 sps:$4 sm:$0xff]   ;;  %v2506_v22 = vld [vmem:[#allocation7 + $0x1a0] ss:$8 sps:$4 sm:$0xff]   ;;  %v2509_v0 = vld [vmem:[#allocation7 + $0x1b0] ss:$8 sps:$4 sm:$0xff]  }
 0x217   :  { %v1139_v26 = vpack.c.bf16 %v1135_v1, %v1131_v25  ;;  %1598 = vmatpush1.bf16.msra.mxu0 %v2425_v23  ;;  %v2511_v23 = vld [vmem:[#allocation7 + $0x1b4] ss:$8 sps:$4 sm:$0xff]   ;;  %v2514_v24 = vld [vmem:[#allocation7 + $0x1c4] ss:$8 sps:$4 sm:$0xff]   ;;  %v2515_v1 = vld [vmem:[#allocation7 + $0x1d0] ss:$8 sps:$4 sm:$0xff]  }
 0x218   :  { %1930 = vmatprep.subr.bf16.mxu0 %v2430_v37  ;;  %v2512_v37 = vld [vmem:[#allocation7 + $0x1c0] ss:$8 sps:$4 sm:$0xff]   ;;  %v2517_v25 = vld [vmem:[#allocation7 + $0x1d4] ss:$8 sps:$4 sm:$0xff]  }
 0x219   :  { %1599 = vmatprep.mubr.bf16.mxu0 %v1139_v26  ;;  %v2518_v26 = vld [vmem:[#allocation7 + $0x1e0] ss:$8 sps:$4 sm:$0xff]  }
 0x21a   :  { %1600 = vmatmul.mubr.bf16.vlgmr.msra.gmra.mrb[0].mxu0 %v1138_v19  ;;  %v2520_v19 = vld [vmem:[#allocation7 + $0x1e4] ss:$8 sps:$4 sm:$0xff]  }
 0x21b   :  { %1931 = vmatpush1.bf16.msra.mxu0 %v2428_v27  ;;  %1962 = vmatprep.mubr.bf16.mxu0 %v2724_v62  ;;  %v2446_v62 = vld [vmem:[#allocation7 + $0x60] ss:$8 sps:$4 sm:$0xff]   ;;  %v2523_v27 = vld [vmem:[#allocation7 + $0x1f4] ss:$8 sps:$4 sm:$0xff]  }
 0x21c   :  { %1932 = vmatprep.subr.bf16.mxu0 %v2433_v28  ;;  %v2521_v28 = vld [vmem:[#allocation7 + $0x1f0] ss:$8 sps:$4 sm:$0xff]  }
 0x21f   :  { %1933 = vmatpush1.bf16.msra.mxu0 %v2431_v29  ;;  %v2016_v29 = vld [vmem:[%s2779_s4] sm:$0x3]  ;;  %s2590_s4 = scalar_lea.vmem %s2042_s13, 512 }
 0x220   :  { %1934 = vmatprep.subr.bf16.mxu0 %v2436_v30  ;;  %v2021_v30 = vrot.slane %v2016_v29, %v2712_v40  ;;  %p2591_p10 = scmp.ne.s32.totalorder %s2042_s13, %s2590_s4  ;;  %p2596_p12 = scmp.lt.s32.totalorder %s2590_s4, %s2590_s4 }
 0x222   :  { %p2597_p13 = por %p2596_p12, %p2595_p11 }
 0x223   :  { %1935 = vmatpush1.bf16.msra.mxu0 %v2434_v31  ;;  %v2025_v31 = vrot.slane %v2016_v29, %v2718_v41 }
 0x224   :  { %1936 = vmatprep.subr.bf16.mxu0 %v2439_v32  ;;  %p2598_p0 = pnand %p2597_p13, %p2591_p10 }
 0x227   :  { %1937 = vmatpush1.bf16.msra.mxu0 %v2437_v20 }
 0x228   :  { %1938 = vmatprep.subr.bf16.mxu0 %v2442_v33 }
 0x22b   :  { %1939 = vmatpush1.bf16.msra.mxu0 %v2440_v34 }
 0x22c   :  { %1940 = vmatprep.subr.bf16.mxu0 %v2445_v35 }
 0x22f   :  { %1941 = vmatpush1.bf16.msra.mxu0 %v2443_v36 }
 0x230   :  { %1942 = vmatprep.subr.bf16.mxu0 %v2448_v38 }
 0x233   :  { %1943 = vmatpush1.bf16.msra.mxu0 %v2446_v62 }
 0x234   :  { %1944 = vmatprep.subr.bf16.mxu0 %v2451_v39 }
 0x237   :  { %1945 = vmatpush1.bf16.msra.mxu0 %v2449_v10 }
 0x238   :  { %1946 = vmatprep.subr.bf16.mxu0 %v2454_v42 }
 0x23b   :  { %1947 = vmatpush1.bf16.msra.mxu0 %v2452_v43 }
 0x23c   :  { %1948 = vmatprep.subr.bf16.mxu0 %v2457_v44 }
 0x23f   :  { %1949 = vmatpush1.bf16.msra.mxu0 %v2455_v45 }
 0x240   :  { %1950 = vmatprep.subr.bf16.mxu0 %v2460_v46 }
 0x243   :  { %1951 = vmatpush1.bf16.msra.mxu0 %v2458_v47 }
 0x244   :  { %1952 = vmatprep.subr.bf16.mxu0 %v2463_v48 }
 0x247   :  { %1953 = vmatpush1.bf16.msra.mxu0 %v2461_v49 }
 0x248   :  { %1954 = vmatprep.subr.bf16.mxu0 %v2466_v50 }
 0x24b   :  { %1955 = vmatpush1.bf16.msra.mxu0 %v2464_v51 }
 0x24c   :  { %1956 = vmatprep.subr.bf16.mxu0 %v2469_v52 }
 0x24f   :  { %1957 = vmatpush1.bf16.msra.mxu0 %v2467_v53 }
 0x250   :  { %1958 = vmatprep.subr.bf16.mxu0 %v2472_v54 }
 0x253   :  { %1959 = vmatpush1.bf16.msra.mxu0 %v2470_v55 }
 0x254   :  { %1960 = vmatprep.subr.bf16.mxu0 %v2475_v56 }
 0x257   :  { %1961 = vmatpush1.bf16.msra.mxu0 %v2473_v57 }
 0x258   :  { %1973 = vmatprep.subr.bf16.mxu0 %v2478_v58 }
 0x25a   :  { %1963 = vmatmul.mubr.bf16.vlgmr.msra.gmra.mrb[0].mxu0 %v2722_v61  ;;  %v2491_v61 = vld [vmem:[#allocation7 + $0x150] ss:$8 sps:$4 sm:$0xff]  }
 0x25b   :  { %1974 = vmatpush1.bf16.msra.mxu0 %v2476_v59  ;;  %2005 = vmatprep.mubr.bf16.mxu0 %v2734_v18  ;;  %v2494_v18 = vld [vmem:[#allocation7 + $0x160] ss:$8 sps:$4 sm:$0xff]  }
 0x25c   :  { %1975 = vmatprep.subr.bf16.mxu0 %v2481_v60 }
 0x25f   :  { %1976 = vmatpush1.bf16.msra.mxu0 %v2479_v63 }
 0x260   :  { %1977 = vmatprep.subr.bf16.mxu0 %v2484_v2 }
 0x263   :  { %1978 = vmatpush1.bf16.msra.mxu0 %v2482_v3 }
 0x264   :  { %1979 = vmatprep.subr.bf16.mxu0 %v2487_v4 }
 0x267   :  { %1980 = vmatpush1.bf16.msra.mxu0 %v2485_v5 }
 0x268   :  { %1981 = vmatprep.subr.bf16.mxu0 %v2490_v6 }
 0x26b   :  { %1982 = vmatpush1.bf16.msra.mxu0 %v2488_v7 }
 0x26c   :  { %1983 = vmatprep.subr.bf16.mxu0 %v2493_v8 }
 0x26f   :  { %1984 = vmatpush1.bf16.msra.mxu0 %v2491_v61 }
 0x270   :  { %1985 = vmatprep.subr.bf16.mxu0 %v2496_v9 }
 0x273   :  { %1986 = vmatpush1.bf16.msra.mxu0 %v2494_v18 }
 0x274   :  { %1987 = vmatprep.subr.bf16.mxu0 %v2499_v11 }
 0x277   :  { %1988 = vmatpush1.bf16.msra.mxu0 %v2497_v12 }
 0x278   :  { %1989 = vmatprep.subr.bf16.mxu0 %v2502_v13 }
 0x27b   :  { %1990 = vmatpush1.bf16.msra.mxu0 %v2500_v14 }
 0x27c   :  { %1991 = vmatprep.subr.bf16.mxu0 %v2505_v15 }
 0x27f   :  { %1992 = vmatpush1.bf16.msra.mxu0 %v2503_v16 }
 0x280   :  { %1993 = vmatprep.subr.bf16.mxu0 %v2508_v21 }
 0x283   :  { %1994 = vmatpush1.bf16.msra.mxu0 %v2506_v22 }
 0x284   :  { %1995 = vmatprep.subr.bf16.mxu0 %v2511_v23 }
 0x287   :  { %1996 = vmatpush1.bf16.msra.mxu0 %v2509_v0 }
 0x288   :  { %1997 = vmatprep.subr.bf16.mxu0 %v2514_v24 }
 0x28b   :  { %1998 = vmatpush1.bf16.msra.mxu0 %v2512_v37 }
 0x28c   :  { %1999 = vmatprep.subr.bf16.mxu0 %v2517_v25 }
 0x28f   :  { %2000 = vmatpush1.bf16.msra.mxu0 %v2515_v1 }
 0x290   :  { %2001 = vmatprep.subr.bf16.mxu0 %v2520_v19 }
 0x293   :  { %2002 = vmatpush1.bf16.msra.mxu0 %v2518_v26 }
 0x294   :  { %2003 = vmatprep.subr.bf16.mxu0 %v2523_v27 }
 0x297   :  { %2004 = vmatpush1.bf16.msra.mxu0 %v2521_v28 }
 0x29a   :  { %2006 = vmatmul.mubr.bf16.vlgmr.msra.gmra.mrb[0].mxu0 %v2732_v17 }
 0x36d   :  { %v2007_v32 = vpop.f32.mrb[0].mxu0 }
 0x36e   :  { %v2028_v20 = vadd.f32 %v2021_v30, %v2007_v32  ;;  %v2009_v33 = vpop.f32.mrb[1].mxu0 }
 0x36f   :  { %v2029_v34 = vadd.f32 %v2025_v31, %v2009_v33  ;;  %v2011_v35 = vpop.f32.mrb[2].mxu0 }
 0x370   :  { %2032 = vst [vmem:[#allocation8] sm:$0xff] %v2028_v20  ;;  %v2030_v36 = vadd.f32 %v2021_v30, %v2011_v35  ;;  %v2013_v38 = vpop.f32.mrb[3].mxu0 }
 0x371   :  { %2033 = vst [vmem:[#allocation8 + $0x8] sm:$0xff] %v2029_v34  ;;  %v2031_v17 = vadd.f32 %v2025_v31, %v2013_v38 }
 0x372   :  { %2034 = vst [vmem:[#allocation8 + $0x10] sm:$0xff] %v2030_v36 }
 0x373   :  { %2035 = vst [vmem:[#allocation8 + $0x18] sm:$0xff] %v2031_v17 }
 0x374   :  { %2601 = shalt.err (!%p2598_p0)
}
 0x375   :  { %s2602_s16 = scalar_lea.hbm %s2780_s5, 512 }
 0x376   :  { %p2603_p1 = scmp.ne.s32.totalorder %s2780_s5, %s2602_s16  ;;  %p2606_p2 = scmp.lt.u32.totalorder %s2602_s16, %s2780_s5 }
 0x378   :  { %p2608_p3 = pnand %p2606_p2, %p2603_p1 }
 0x37a   :  { %2611 = shalt.err (!%p2608_p3)
}
 0x37b   :  { %2047 = dma.vmem_to_hbm [thread:$0]  %s2042_s13, 512, %s2780_s5, [#allocation4], %s2622_s1, %s2622_s1, %s2623_s17  }
 0x37c   :  { %2616 = dma.done.wait [#allocation4], 512  }
 0x37d   :  { %2617 = vsyncadd [#allocation4], 4294966784 }
 0x37e   :  { %2051 = vsyncpa [#allocation3], 1 }
 0x37f   :  { %2052 = vsyncpa [#allocation6], 1 }
 0x380   :  { %2053 = vsyncpa [#allocation4], 1 }

</bundles_post_ra>
